<compile_context>
chip_gen: v7x
topology: tpu7x:2x2x1
jax: 0.10.0
libtpu: 0.0.40
codegen_flags: <defaults>
</compile_context>

<pallas_src>
import functools

import jax
import jax.numpy as jnp
from jax import lax
from jax.experimental import pallas as pl
from jax.experimental.pallas import tpu as pltpu

# Apples-to-apples numerics between the Pallas kernels and the pure-JAX reference
# (and between compiled Mosaic and interpret mode).
jax.config.update("jax_default_matmul_precision", "highest")


# ----------------------------------------------------------------------------
# Tiled linear projection:  out = x @ w (+ b)
#   x: (M, K), w: (K, Nout), b: (1, Nout) optional
# ----------------------------------------------------------------------------
def _linear_bias_kernel(x_ref, w_ref, b_ref, o_ref, acc_ref):
    @pl.when(pl.program_id(2) == 0)
    def _init():
        acc_ref[...] = jnp.zeros_like(acc_ref)

    acc_ref[...] += jnp.dot(x_ref[...], w_ref[...],
                            preferred_element_type=jnp.float32)

    @pl.when(pl.program_id(2) == pl.num_programs(2) - 1)
    def _done():
        o_ref[...] = (acc_ref[...] + b_ref[...].astype(jnp.float32)).astype(o_ref.dtype)


def _linear_nobias_kernel(x_ref, w_ref, o_ref, acc_ref):
    @pl.when(pl.program_id(2) == 0)
    def _init():
        acc_ref[...] = jnp.zeros_like(acc_ref)

    acc_ref[...] += jnp.dot(x_ref[...], w_ref[...],
                            preferred_element_type=jnp.float32)

    @pl.when(pl.program_id(2) == pl.num_programs(2) - 1)
    def _done():
        o_ref[...] = acc_ref[...].astype(o_ref.dtype)


def _pick_tile(dim, candidates):
    for c in candidates:
        if dim % c == 0:
            return c
    return dim  # full extent is always a legal block size


def linear_pallas(x2d, w, b=None):
    M, K = x2d.shape
    K2, Nout = w.shape
    assert K == K2
    # MXU-friendly tiles: K multiples of 256/512, Nout >= 256 when possible.
    tm = _pick_tile(M, (512, 256, 128, 64, 32, 16, 8))
    tn = _pick_tile(Nout, (512, 256, 128))
    tk = _pick_tile(K, (512, 256))
    grid = (M // tm, Nout // tn, K // tk)

    in_specs = [
        pl.BlockSpec((tm, tk), lambda i, j, k: (i, k)),
        pl.BlockSpec((tk, tn), lambda i, j, k: (k, j)),
    ]
    args = [x2d, w]
    if b is not None:
        in_specs.append(pl.BlockSpec((1, tn), lambda i, j, k: (0, j)))
        args.append(b.reshape(1, Nout))
        kern = _linear_bias_kernel
    else:
        kern = _linear_nobias_kernel

    itemsize = jnp.dtype(x2d.dtype).itemsize
    # double-buffered input/output tiles + fp32 accumulator + bias row
    vmem_bytes = 2 * (tm * tk + tk * tn + tm * tn) * itemsize + tm * tn * 4 + 2 * tn * 4
    vmem_limit = int(min(max(2 * vmem_bytes, 32 * 1024 * 1024), 64 * 1024 * 1024))

    return pl.pallas_call(
        kern,
        out_shape=jax.ShapeDtypeStruct((M, Nout), x2d.dtype),
        grid_spec=pltpu.PrefetchScalarGridSpec(
            num_scalar_prefetch=0,
            grid=grid,
            in_specs=in_specs,
            out_specs=pl.BlockSpec((tm, tn), lambda i, j, k: (i, j)),
            scratch_shapes=[pltpu.VMEM((tm, tn), jnp.float32)],
        ),
        compiler_params=pltpu.CompilerParams(
            dimension_semantics=("parallel", "parallel", "arbitrary"),
            vmem_limit_bytes=vmem_limit),
    )(*args)


# ----------------------------------------------------------------------------
# Attention kernel: one batch per grid step, all heads inside the kernel.
#   packed=True : input block is (1, N, 3D) holding [q | k | v] columns
#   packed=False: input block is (1, N, D), q = k = v = x
# Output block is a lane-dense (1, N, D) slab (heads concatenated along lanes),
# so no transpose / head reshuffle is needed outside the kernel.
# ----------------------------------------------------------------------------
def _mha_kernel(qkv_ref, o_ref, *, num_heads, head_dim, scale, packed):
    D = num_heads * head_dim
    blk = qkv_ref[0]                              # (N, C)
    if packed:
        q = blk[:, 0:D]
        k = blk[:, D:2 * D]
        v = blk[:, 2 * D:3 * D]
    else:
        q = k = v = blk

    # Fold the softmax scale into q once (O(N*D) instead of O(N^2) per head).
    q = q * jnp.asarray(scale, dtype=q.dtype)

    outs = []
    for h in range(num_heads):                    # static unroll over heads
        lo = h * head_dim
        hi = lo + head_dim
        qh = q[:, lo:hi]
        kh = k[:, lo:hi]
        vh = v[:, lo:hi]
        # Contract over head_dim directly (no explicit transpose of k).
        s = lax.dot_general(qh, kh, (((1,), (1,)), ((), ())),
                            preferred_element_type=jnp.float32)      # (N, N) f32
        s = s - jnp.max(s, axis=-1, keepdims=True)
        p = jnp.exp(s)
        l = jnp.sum(p, axis=-1, keepdims=True)                       # (N, 1) f32
        o = jnp.dot(p.astype(vh.dtype), vh,
                    preferred_element_type=jnp.float32)              # (N, hd) f32
        # Exact normalization AFTER p@v: fewer multiplies than normalizing p,
        # and avoids the low-precision approximate reciprocal.
        outs.append(o * (1.0 / l))

    y = jnp.concatenate(outs, axis=-1)            # (N, D) lane-dense
    o_ref[0] = y.astype(o_ref.dtype)


def attention_pallas(qkv3, num_heads, head_dim, scale, packed=True):
    B, N, C = qkv3.shape
    D = num_heads * head_dim
    kern = functools.partial(_mha_kernel, num_heads=num_heads,
                             head_dim=head_dim, scale=scale, packed=packed)
    return pl.pallas_call(
        kern,
        out_shape=jax.ShapeDtypeStruct((B, N, D), qkv3.dtype),
        grid_spec=pltpu.PrefetchScalarGridSpec(
            num_scalar_prefetch=0,
            grid=(B,),
            in_specs=[pl.BlockSpec((1, N, C), lambda b: (b, 0, 0))],
            out_specs=pl.BlockSpec((1, N, D), lambda b: (b, 0, 0)),
        ),
        compiler_params=pltpu.CompilerParams(
            dimension_semantics=("parallel",)),
    )(qkv3)
    # TODO(synk): for very long sequences add a KV-tiled online-softmax path
    # (the materialized (N, N) score tile is fine at ViT-scale N).


# ----------------------------------------------------------------------------
# Module wrapper (eval semantics; dropout ratios must be 0.0 -> identity)
# ----------------------------------------------------------------------------
class MultiHeadAttentionPallas:
    def __init__(self, dim, num_heads=8, qkv_bias=False, qk_scale=None,
                 attn_drop_ratio=0.0, proj_drop_ratio=0.0, with_qkv=True,
                 key=None, dtype=jnp.float32):
        if key is None:
            key = jax.random.PRNGKey(0)
        self.dim = dim
        self.num_heads = num_heads
        self.head_dim = dim // num_heads
        self.scale = qk_scale or self.head_dim ** (-0.5)
        self.with_qkv = with_qkv
        self.qkv_bias = qkv_bias
        assert attn_drop_ratio == 0.0 and proj_drop_ratio == 0.0
        # TODO(synk): dropout with nonzero ratio not implemented (module default is 0.0).

        if self.with_qkv:
            k1, k2, k3, k4 = jax.random.split(key, 4)
            bound = 1.0 / (dim ** 0.5)
            w_qkv = jax.random.uniform(k1, (3 * dim, dim), dtype, -bound, bound)
            w_proj = jax.random.uniform(k3, (dim, dim), dtype, -bound, bound)
            # Pre-transpose once at init (y = x @ W^T); avoids a per-call HBM transpose.
            self.w_qkv_t = jnp.asarray(w_qkv.T)      # (D, 3D)
            self.w_proj_t = jnp.asarray(w_proj.T)    # (D, D)
            if qkv_bias:
                self.b_qkv = jax.random.uniform(k2, (3 * dim,), dtype, -bound, bound)
            else:
                self.b_qkv = jnp.zeros((3 * dim,), dtype)
            self.b_proj = jax.random.uniform(k4, (dim,), dtype, -bound, bound)

    def __call__(self, x):
        B, N, D = x.shape
        if self.with_qkv:
            x2d = x.reshape(B * N, D)
            qkv = linear_pallas(x2d, self.w_qkv_t,
                                self.b_qkv if self.qkv_bias else None)   # (B*N, 3D)
            qkv3 = qkv.reshape(B, N, 3 * D)          # metadata-only reshape, no HBM copy
            y = attention_pallas(qkv3, self.num_heads, self.head_dim,
                                 self.scale, packed=True)                # (B, N, D)
            out = linear_pallas(y.reshape(B * N, D), self.w_proj_t, self.b_proj)
            return out.reshape(B, N, D)
        else:
            return attention_pallas(x, self.num_heads, self.head_dim,
                                    self.scale, packed=False)


# ----------------------------------------------------------------------------
# Pure-JAX reference (mirrors the PyTorch forward)
# ----------------------------------------------------------------------------
def reference_forward(model, x):
    B, N, D = x.shape
    H, hd = model.num_heads, model.head_dim
    if model.with_qkv:
        qkv = x @ model.w_qkv_t + model.b_qkv
        qkv = qkv.reshape(B, N, 3, H, hd).transpose(2, 0, 3, 1, 4)
        q, k, v = qkv[0], qkv[1], qkv[2]
    else:
        q = k = v = x.reshape(B, N, H, hd).transpose(0, 2, 1, 3)
    attn = jax.nn.softmax((q @ jnp.swapaxes(k, -2, -1)) * model.scale, axis=-1)
    y = (attn @ v).transpose(0, 2, 1, 3).reshape(B, N, D)
    if model.with_qkv:
        y = y @ model.w_proj_t + model.b_proj
    return y


if __name__ == "__main__":
    key = jax.random.PRNGKey(0)
    kx, kp = jax.random.split(key)

    B, N, D = 2, 8, 32          # batch, seq (num patches), hidden dim
    num_heads = 8               # head_dim = 4

    x = jax.random.normal(kx, (B, N, D), jnp.float32)

    # with_qkv=True (default config, as in the towhee docstring example)
    model = MultiHeadAttentionPallas(dim=D, num_heads=num_heads, key=kp)
    out = jax.block_until_ready(model(x))
    assert out.shape == (B, N, D)
    ref = reference_forward(model, x)
    assert jnp.allclose(out, ref, atol=2e-3, rtol=2e-3), \
        float(jnp.max(jnp.abs(out - ref)))

    # with_qkv=False path (q = k = v = x, no projections)
    model2 = MultiHeadAttentionPallas(dim=D, num_heads=num_heads,
                                      with_qkv=False, key=kp)
    out2 = jax.block_until_ready(model2(x))
    ref2 = reference_forward(model2, x)
    assert jnp.allclose(out2, ref2, atol=2e-3, rtol=2e-3), \
        float(jnp.max(jnp.abs(out2 - ref2)))

    print("KERNEL_OK")
</pallas_src>

<mosaic_0001>
module attributes {stable_mosaic.version = 11 : i64} {
  func.func @_linear_nobias_kernel(%arg0: i32, %arg1: i32, %arg2: i32, %arg3: memref<16x32xf32, #tpu.memory_space<vmem>>, %arg4: memref<32x96xf32, #tpu.memory_space<vmem>>, %arg5: memref<16x96xf32, #tpu.memory_space<vmem>>, %arg6: memref<16x96xf32, #tpu.memory_space<vmem>>) attributes {dimension_semantics = [#tpu.dimension_semantics<parallel>, #tpu.dimension_semantics<parallel>, #tpu.dimension_semantics<arbitrary>], iteration_bounds = array<i64: 1, 1, 1>, scalar_prefetch = 0 : i64, scratch_operands = 1 : i64, tpu.core_type = #tpu.core_type<tc>, window_params = [{transform_indices = @transform_0, window_bounds = array<i64: 16, 32>}, {transform_indices = @transform_1, window_bounds = array<i64: 32, 96>}, {transform_indices = @transform_2, window_bounds = array<i64: 16, 96>}]} {
    %c0_i32 = arith.constant 0 : i32
    %0 = arith.cmpi eq, %arg2, %c0_i32 : i32
    %1 = arith.extui %0 : i1 to i32
    %c0_i32_0 = arith.constant 0 : i32
    %2 = arith.cmpi ne, %1, %c0_i32_0 : i32
    scf.if %2 {
      %cst_10 = arith.constant 0.000000e+00 : f32
      %12 = vector.broadcast %cst_10 : f32 to vector<16x96xf32>
      %c0_11 = arith.constant 0 : index
      %c0_12 = arith.constant 0 : index
      %13 = vector.load %arg6[%c0_11, %c0_12] : memref<16x96xf32, #tpu.memory_space<vmem>>, vector<16x96xf32>
      tpu.vector_store %arg6[%c0_11, %c0_12], %12 {strides = array<i32>} : memref<16x96xf32, #tpu.memory_space<vmem>>, vector<16x96xf32>,
    } else {
    }
    %c0 = arith.constant 0 : index
    %c0_1 = arith.constant 0 : index
    %3 = vector.load %arg6[%c0, %c0_1] : memref<16x96xf32, #tpu.memory_space<vmem>>, vector<16x96xf32>
    %c0_2 = arith.constant 0 : index
    %c0_3 = arith.constant 0 : index
    %4 = vector.load %arg3[%c0_2, %c0_3] : memref<16x32xf32, #tpu.memory_space<vmem>>, vector<16x32xf32>
    %c0_4 = arith.constant 0 : index
    %c0_5 = arith.constant 0 : index
    %5 = vector.load %arg4[%c0_4, %c0_5] : memref<32x96xf32, #tpu.memory_space<vmem>>, vector<32x96xf32>
    %cst = arith.constant dense<0.000000e+00> : vector<16x96xf32>
    %6 = tpu.matmul %4, %5, %cst {dimension_numbers = #tpu.dot_dimension_numbers<[1], [0], [0], [1], [0, 0, 1, 1], [], []>, precision = #tpu.contract_precision<fp32>} : vector<16x32xf32>, vector<32x96xf32>, vector<16x96xf32> -> vector<16x96xf32>
    %7 = arith.addf %3, %6 : vector<16x96xf32>
    %c0_6 = arith.constant 0 : index
    %c0_7 = arith.constant 0 : index
    %8 = vector.load %arg6[%c0_6, %c0_7] : memref<16x96xf32, #tpu.memory_space<vmem>>, vector<16x96xf32>
    tpu.vector_store %arg6[%c0_6, %c0_7], %7 {strides = array<i32>} : memref<16x96xf32, #tpu.memory_space<vmem>>, vector<16x96xf32>,
    %c0_i32_8 = arith.constant 0 : i32
    %9 = arith.cmpi eq, %arg2, %c0_i32_8 : i32
    %10 = arith.extui %9 : i1 to i32
    %c0_i32_9 = arith.constant 0 : i32
    %11 = arith.cmpi ne, %10, %c0_i32_9 : i32
    scf.if %11 {
      %c0_10 = arith.constant 0 : index
      %c0_11 = arith.constant 0 : index
      %12 = vector.load %arg6[%c0_10, %c0_11] : memref<16x96xf32, #tpu.memory_space<vmem>>, vector<16x96xf32>
      %c0_12 = arith.constant 0 : index
      %c0_13 = arith.constant 0 : index
      %13 = vector.load %arg5[%c0_12, %c0_13] : memref<16x96xf32, #tpu.memory_space<vmem>>, vector<16x96xf32>
      tpu.vector_store %arg5[%c0_12, %c0_13], %12 {strides = array<i32>} : memref<16x96xf32, #tpu.memory_space<vmem>>, vector<16x96xf32>,
    } else {
    }
    return
  }
  func.func @transform_0(%arg0: i32, %arg1: i32, %arg2: i32) -> (i32, i32) {
    %c0_i32 = arith.constant 0 : i32
    return %arg0, %arg2 : i32, i32
  }
  func.func @transform_1(%arg0: i32, %arg1: i32, %arg2: i32) -> (i32, i32) {
    %c0_i32 = arith.constant 0 : i32
    return %arg2, %arg1 : i32, i32
  }
  func.func @transform_2(%arg0: i32, %arg1: i32, %arg2: i32) -> (i32, i32) {
    %c0_i32 = arith.constant 0 : i32
    return %arg0, %arg1 : i32, i32
  }
}

</mosaic_0001>

<bundles_post_ra>
// kernel: tpu_custom_call.1
= control target key start
LH: loop header
LB: loop body
LE: loop exit
PB: predicated region body
PF: predicated region fallthrough
CT: control target
= control target key end

     0   :  { %7 = vsyncpa [#allocation4], 0  ;;  %s942_s0 = inlined_call_operand.hbm [shape: f32[16,32], index: 0, kind: input, shape index: {}]   ;;  %s943_s1 = inlined_call_operand.hbm [shape: f32[32,96], index: 1, kind: input, shape index: {}]   ;;  %s944_s2 = inlined_call_operand.hbm [shape: f32[16,96], index: 2, kind: output, shape index: {}]  }
   0x1   :  { %8 = vsyncpa [#allocation7], 0 }
   0x2   :  { %9 = vsyncpa [#allocation5], 0  ;;  %s858_s9 = smov [#allocation3]   ;;  %s786_s13 = scalar_lea.hbm %s942_s0, 256 }
   0x3   :  { %s15_s10 = sshll.u32 %s858_s9, 4  ;;  %p787_p0 = scmp.ne.s32.totalorder %s942_s0, %s786_s13  ;;  %s16_s10 = int_to_ptr.vmem [resolvable:$true] %s15_s10 }
   0x4   :  { %p790_p1 = scmp.lt.u32.totalorder %s786_s13, %s942_s0 }
   0x6   :  { %p792_p2 = pnand %p790_p1, %p787_p0 }
   0x8   :  { %795 = shalt.err (!%p792_p2)
}
   0x9   :  { %s796_s18 = scalar_lea.vmem %s16_s10, 256  ;;  %p801_p4 = scmp.lt.s32.totalorder %s16_s10, %s16_s10 }
   0xa   :  { %p797_p3 = scmp.ne.s32.totalorder %s16_s10, %s796_s18  ;;  %p802_p5 = scmp.lt.s32.totalorder %s796_s18, %s796_s18 }
   0xc   :  { %p803_p6 = por %p802_p5, %p801_p4 }
   0xe   :  { %p804_p7 = pnand %p803_p6, %p797_p3 }
  0x10   :  { %807 = shalt.err (!%p804_p7)
}
  0x11   :  { %s859_s19 = smov 128   ;;  %s860_s20 = smov 8  }
  0x12   :  { %21 = dma.hbm_to_vmem [thread:$0]  %s942_s0, 256, %s16_s10, [#allocation4], %s859_s19, %s859_s19, %s860_s20  }
  0x13   :  { %s861_s23 = smov [#allocation6]   ;;  %s808_s27 = scalar_lea.hbm %s943_s1, 512 }
  0x14   :  { %s27_s24 = sshll.u32 %s861_s23, 4  ;;  %p809_p8 = scmp.ne.s32.totalorder %s943_s1, %s808_s27  ;;  %s28_s24 = int_to_ptr.vmem [resolvable:$true] %s27_s24 }
  0x15   :  { %p812_p9 = scmp.lt.u32.totalorder %s808_s27, %s943_s1 }
  0x17   :  { %p814_p10 = pnand %p812_p9, %p809_p8 }
  0x19   :  { %817 = shalt.err (!%p814_p10)
}
  0x1a   :  { %s818_s4 = scalar_lea.vmem %s28_s24, 512  ;;  %p823_p12 = scmp.lt.s32.totalorder %s28_s24, %s28_s24 }
  0x1b   :  { %p819_p11 = scmp.ne.s32.totalorder %s28_s24, %s818_s4  ;;  %p824_p13 = scmp.lt.s32.totalorder %s818_s4, %s818_s4 }
  0x1d   :  { %p825_p0 = por %p824_p13, %p823_p12 }
  0x1f   :  { %p826_p1 = pnand %p825_p0, %p819_p11 }
  0x21   :  { %829 = shalt.err (!%p826_p1)
}
  0x22   :  { %33 = dma.hbm_to_vmem [thread:$0]  %s943_s1, 512, %s28_s24, [#allocation7], %s859_s19, %s859_s19, %s860_s20  }
  0x23   :  { %852 = dma.done.wait [#allocation4], 256  }
  0x24   :  { %853 = vsyncadd [#allocation4], 4294967040 }
  0x25   :  { %854 = dma.done.wait [#allocation7], 512  }
  0x26   :  { %855 = vsyncadd [#allocation7], 4294966784  ;;  %vm55_vm0 = vcmask 261120   ;;  %v51_v0 = vld [vmem:[#allocation6] sm:$0xff]  ;;  %v52_v1 = vld [vmem:[#allocation6 + $0x8] sm:$0xff]  ;;  %vm44_vm1 = vcmask 785408  }
  0x27   :  { %v53_v2 = vld [vmem:[#allocation6 + $0x10] sm:$0xff]  ;;  %v63_v3 = vand.u32 4294901760, %v51_v0  ;;  %v66_v4 = vand.u32 4294901760, %v52_v1  ;;  %v54_v5 = vld [vmem:[#allocation6 + $0x18] sm:$0xff]  ;;  %v862_v46 = vmov 0.0   ;;  %s863_s1 = smov [#allocation8]  }
  0x28   :  { %v69_v6 = vand.u32 4294901760, %v53_v2  ;;  %v49_v7 = vld [vmem:[#allocation3] sm:$0xff]  ;;  %v50_v8 = vld [vmem:[#allocation3 + $0x8] sm:$0xff]  ;;  %v72_v9 = vand.u32 4294901760, %v54_v5  ;;  %46 = vst.msk [vmem:[#allocation2 + $0x8] sm:$0xff] %vm44_vm1, %v862_v46  ;;  %45 = vst.msk [vmem:[#allocation2] sm:$0xff] %vm44_vm1, %v862_v46 }
  0x29   :  { %v57_v10 = vsel %vm55_vm0, %v49_v7, 0  ;;  %v60_v11 = vsel %vm55_vm0, %v50_v8, 0  ;;  %v722_v12 = vpack.c.bf16 %v66_v4, %v63_v3  ;;  %v153_v15 = vsub.f32 %v51_v0, %v63_v3  ;;  %s607_s6 = sshll.u32 %s863_s1, 4  ;;  %s608_s6 = int_to_ptr.vmem [resolvable:$true] %s607_s6 }
  0x2a   :  { %v909_v13 = vand.u32 4294901760, %v57_v10  ;;  %v911_v14 = vand.u32 4294901760, %v60_v11  ;;  %v726_v16 = vpack.c.bf16 %v72_v9, %v69_v6  ;;  %v160_v17 = vsub.f32 %v52_v1, %v66_v4  ;;  %s830_s7 = scalar_lea.vmem %s608_s6, 256  ;;  %p835_p3 = scmp.lt.s32.totalorder %s608_s6, %s608_s6 }
  0x2b   :  { %v167_v18 = vsub.f32 %v53_v2, %v69_v6  ;;  %v174_v19 = vsub.f32 %v54_v5, %v72_v9  ;;  %723 = vmatprep.subr.bf16.mxu1 %v722_v12  ;;  %747 = vmatprep.subr.bf16.mxu0 %v722_v12  ;;  %v154_v22 = vand.u32 4294901760, %v153_v15  ;;  %p831_p2 = scmp.ne.s32.totalorder %s608_s6, %s830_s7  ;;  %p836_p4 = scmp.lt.s32.totalorder %s830_s7, %s830_s7 }
  0x2c   :  { %v132_v20 = vsub.f32 %v57_v10, %v909_v13  ;;  %v142_v21 = vsub.f32 %v60_v11, %v911_v14  ;;  %725 = vmatpush3.bf16.msra.mxu1 %v722_v12  ;;  %749 = vmatpush3.bf16.msra.mxu0 %v722_v12  ;;  %v161_v23 = vand.u32 4294901760, %v160_v17  ;;  %v738_v44 = vpack.c.bf16 %v160_v17, %v153_v15 }
  0x2d   :  { %v168_v24 = vand.u32 4294901760, %v167_v18  ;;  %v175_v25 = vand.u32 4294901760, %v174_v19  ;;  %727 = vmatprep.subr.bf16.mxu1 %v726_v16  ;;  %751 = vmatprep.subr.bf16.mxu0 %v726_v16  ;;  %v155_v28 = vsub.f32 %v153_v15, %v154_v22  ;;  %v742_v45 = vpack.c.bf16 %v174_v19, %v167_v18  ;;  %p837_p5 = por %p836_p4, %p835_p3 }
  0x2e   :  { %v133_v26 = vand.u32 4294901760, %v132_v20  ;;  %v143_v27 = vand.u32 4294901760, %v142_v21  ;;  %v162_v29 = vsub.f32 %v160_v17, %v161_v23  ;;  %v754_v30 = vpack.c.bf16 %v161_v23, %v154_v22 }
  0x2f   :  { %v169_v31 = vsub.f32 %v167_v18, %v168_v24  ;;  %v176_v32 = vsub.f32 %v174_v19, %v175_v25  ;;  %v156_v35 = vand.u32 4294901760, %v155_v28  ;;  %v758_v43 = vpack.c.bf16 %v175_v25, %v168_v24  ;;  %v48_v48 = vld [vmem:[#allocation2 + $0x8] sm:$0xff]  ;;  %v47_v52 = vld [vmem:[#allocation2] sm:$0xff]  ;;  %p838_p6 = pnand %p837_p5, %p831_p2 }
  0x30   :  { %v134_v33 = vsub.f32 %v132_v20, %v133_v26  ;;  %697 = vmatprep.mubr.f32.mxu0 %v133_v26  ;;  %v144_v34 = vsub.f32 %v142_v21, %v143_v27  ;;  %729 = vmatpush3.bf16.msra.mxu1 %v726_v16  ;;  %v163_v36 = vand.u32 4294901760, %v162_v29 }
  0x31   :  { %753 = vmatpush3.bf16.msra.mxu0 %v726_v16  ;;  %v170_v37 = vand.u32 4294901760, %v169_v31  ;;  %v177_v38 = vand.u32 4294901760, %v176_v32 }
  0x32   :  { %v135_v39 = vand.u32 4294901760, %v134_v33  ;;  %v145_v40 = vand.u32 4294901760, %v144_v34  ;;  %755 = vmatprep.subr.bf16.mxu0 %v754_v30  ;;  %v730_v41 = vpack.c.bf16 %v163_v36, %v156_v35 }
  0x33   :  { %v734_v42 = vpack.c.bf16 %v177_v38, %v170_v37 }
  0x34   :  { %664 = vmatprep.mubr.f32.mxu1 %v135_v39  ;;  %698 = vmatmul.mubr.f32.vlgmr.msra.gmra.mrb[0].mxu0 %v143_v27 }
  0x35   :  { %665 = vmatmul.mubr.f32.vlgmr.msra.gmra.mrb[0].mxu1 %v145_v40  ;;  %731 = vmatprep.subr.bf16.mxu1 %v730_v41 }
  0x36   :  { %733 = vmatpush3.bf16.msra.mxu1 %v730_v41  ;;  %757 = vmatpush3.bf16.msra.mxu0 %v754_v30 }
  0x37   :  { %735 = vmatprep.subr.bf16.mxu1 %v734_v42  ;;  %759 = vmatprep.subr.bf16.mxu0 %v758_v43 }
  0x38   :  { %675 = vmatprep.mubr.f32.mxu1 %v909_v13  ;;  %708 = vmatprep.mubr.f32.mxu0 %v909_v13 }
  0x3a   :  { %737 = vmatpush3.bf16.msra.mxu1 %v734_v42  ;;  %761 = vmatpush3.bf16.msra.mxu0 %v758_v43 }
  0x3b   :  { %739 = vmatprep.subr.bf16.mxu1 %v738_v44  ;;  %763 = vmatprep.subr.bf16.mxu0 %v722_v12 }
  0x3d   :  { %676 = vmatmul.mubr.f32.vlgmr.msra.gmra.mrb[0].mxu1 %v911_v14  ;;  %709 = vmatmul.mubr.f32.vlgmr.msra.gmra.mrb[0].mxu0 %v911_v14 }
  0x3e   :  { %741 = vmatpush3.bf16.msra.mxu1 %v738_v44  ;;  %765 = vmatpush3.bf16.msra.mxu0 %v722_v12 }
  0x3f   :  { %743 = vmatprep.subr.bf16.mxu1 %v742_v45  ;;  %767 = vmatprep.subr.bf16.mxu0 %v726_v16 }
  0x40   :  { %686 = vmatprep.mubr.f32.mxu1 %v132_v20  ;;  %719 = vmatprep.mubr.f32.mxu0 %v909_v13 }
  0x42   :  { %745 = vmatpush3.bf16.msra.mxu1 %v742_v45  ;;  %769 = vmatpush3.bf16.msra.mxu0 %v726_v16 }
  0x45   :  { %687 = vmatmul.mubr.f32.vlgmr.msra.gmra.mrb[0].mxu1 %v142_v21  ;;  %720 = vmatmul.mubr.f32.vlgmr.msra.gmra.mrb[0].mxu0 %v911_v14 }
 0x118   :  { %v688_v47 = vpop.f32.mrb[0].mxu1  ;;  %v721_v49 = vpop.f32.mrb[0].mxu0 }
 0x119   :  { %v770_v50 = vadd.f32 %v721_v49, %v688_v47  ;;  %v324_v51 = vpop.f32.mrb[1].mxu1  ;;  %v580_v53 = vpop.f32.mrb[1].mxu0 }
 0x11a   :  { %v771_v54 = vadd.f32 %v580_v53, %v324_v51 }
 0x11b   :  { %v591_v55 = vadd.f32 %v770_v50, %v48_v48 }
 0x11c   :  { %v590_v56 = vadd.f32 %v771_v54, %v47_v52 }
 0x11d   :  { %594 = vst.msk [vmem:[#allocation2 + $0x8] sm:$0xff] %vm44_vm1, %v591_v55 }
 0x11e   :  { %593 = vst.msk [vmem:[#allocation2] sm:$0xff] %vm44_vm1, %v590_v56 }
 0x124   :  { %v599_v57 = vld [vmem:[#allocation2 + $0x8] sm:$0xff] }
 0x125   :  { %v598_v58 = vld [vmem:[#allocation2] sm:$0xff]  ;;  %601 = vst.msk [vmem:[#allocation8 + $0x8] sm:$0xff] %vm44_vm1, %v599_v57 }
 0x126   :  { %600 = vst.msk [vmem:[#allocation8] sm:$0xff] %vm44_vm1, %v598_v58 }
 0x127   :  { %841 = shalt.err (!%p838_p6)
}
 0x128   :  { %s842_s10 = scalar_lea.hbm %s944_s2, 256 }
 0x129   :  { %p843_p7 = scmp.ne.s32.totalorder %s944_s2, %s842_s10  ;;  %p846_p8 = scmp.lt.u32.totalorder %s842_s10, %s944_s2 }
 0x12b   :  { %p848_p9 = pnand %p846_p8, %p843_p7 }
 0x12d   :  { %851 = shalt.err (!%p848_p9)
}
 0x12e   :  { %613 = dma.vmem_to_hbm [thread:$0]  %s608_s6, 256, %s944_s2, [#allocation5], %s859_s19, %s859_s19, %s860_s20  }
 0x12f   :  { %856 = dma.done.wait [#allocation5], 256  }
 0x130   :  { %857 = vsyncadd [#allocation5], 4294967040 }
 0x131   :  { %617 = vsyncpa [#allocation4], 1 }
 0x132   :  { %618 = vsyncpa [#allocation7], 1 }
 0x133   :  { %619 = vsyncpa [#allocation5], 1 }

</bundles_post_ra>
